<compile_context>
chip_gen: v5e
topology: v5e:2x2
jax: 0.10.0
libtpu: 0.0.40
codegen_flags: <defaults>
</compile_context>

<pallas_src>
import jax
import jax.numpy as jnp
from jax import lax
from jax.experimental import pallas as pl
from jax.experimental.pallas import tpu as pltpu

EPS = 1e-12  # F.normalize default eps (clamp applied to the norm)


def _round_up(n, m):
    return ((n + m - 1) // m) * m


def _mxu_tile_for_device():
    """MXU-native output tile: 128 on v5e (4x 128x128 MXU), 256 on v6e/v7x."""
    try:
        kind = jax.devices()[0].device_kind.lower()
    except Exception:
        return 256
    if "v5e" in kind or "v5 lite" in kind or "v5litepod" in kind:
        return 128
    return 256


def _cosine_head_kernel(inv_x_ref, x_ref, wt_ref, o_ref):
    """out[tb, tc] = (x / ||x||_row) @ normalize(W)^T   for one (B, C) tile.

    inv_x_ref : [tb, 1]   f32   precomputed 1 / max(||x_row||, eps)
    x_ref     : [tb, Dp]  bf16  row tile of the padded embeddings
    wt_ref    : [Dp, tc]  bf16  column tile of the pre-normalized, transposed W
    o_ref     : [tb, tc]  f32   cosine logits (lane-dense, unmasked stores)
    """
    raw = jnp.dot(x_ref[...], wt_ref[...],
                  preferred_element_type=jnp.float32)   # bf16 MXU, f32 accumulate
    o_ref[...] = raw * inv_x_ref[...]                   # single epilogue multiply


def make_cosine_classifier(weight):
    """Prepare the constant weight once and return a jitted forward(x) function.

    weight : [C, D] float32.  Pad / row-normalize / transpose / bf16-cast happen
    here, at parameter-load time, never in the per-call path.
    """
    C, D = weight.shape
    tile = _mxu_tile_for_device()

    Dp = _round_up(D, 128)
    tc = tile
    Cp = _round_up(C, tc)
    if Cp // tc < 2:            # guarantee >= 2 parallel C steps (v7x: 2 TCs)
        tc = 128
        Cp = max(_round_up(C, 128), 2 * 128)
    n_c = Cp // tc

    # --- one-time constant-weight preparation (eager, runs exactly once) ---
    w_p = jnp.pad(weight.astype(jnp.float32), ((0, Cp - C), (0, Dp - D)))
    w_norm = jnp.sqrt(jnp.sum(w_p * w_p, axis=-1, keepdims=True))
    w_p = w_p / jnp.maximum(w_norm, EPS)      # F.normalize(W); padded rows stay 0
    wt_bf16 = jax.device_put(w_p.T.astype(jnp.bfloat16))   # [Dp, Cp] bf16

    @jax.jit
    def forward(x):
        """x: [B, 1, D] float32  ->  [B, 1, C] float32 cosine-similarity logits."""
        B, one, d = x.shape
        assert one == 1 and d == D
        x2d = x.reshape(B, D).astype(jnp.float32)

        # Row norms once per call, in f32, outside the grid (R2).
        x_ss = jnp.sum(x2d * x2d, axis=-1, keepdims=True)          # [B, 1]
        inv_x = lax.rsqrt(jnp.maximum(x_ss, EPS * EPS))            # 1/max(||x||,eps)

        # B tiling: MXU-sized tiles for large B (R5), full extent for small B.
        if B > 128:
            tb = tile
            Bp = _round_up(B, tb)
        else:
            Bp = _round_up(B, 16)      # bf16 sublane-packing friendly
            tb = Bp
        n_b = Bp // tb

        x_b = jnp.pad(x2d, ((0, Bp - B), (0, Dp - D))).astype(jnp.bfloat16)
        inv_x_p = jnp.pad(inv_x, ((0, Bp - B), (0, 0)))

        # Grid: C outer, B inner.  W's block index (0, j) is constant across the
        # whole inner B sweep, so each W tile is DMA'd exactly once (R4); x and
        # inv_x tiles are small bf16/f32 strips.  Per-step double-buffered VMEM
        # is a few hundred KiB -- far below even v7x's 32 MiB scoped default.
        out = pl.pallas_call(
            _cosine_head_kernel,
            out_shape=jax.ShapeDtypeStruct((Bp, Cp), jnp.float32),
            grid_spec=pltpu.PrefetchScalarGridSpec(
                num_scalar_prefetch=0,
                grid=(n_c, n_b),
                in_specs=[
                    pl.BlockSpec((tb, 1), lambda j, i: (i, 0)),    # inv_x  (f32)
                    pl.BlockSpec((tb, Dp), lambda j, i: (i, 0)),   # x      (bf16)
                    pl.BlockSpec((Dp, tc), lambda j, i: (0, j)),   # norm(W)^T (bf16)
                ],
                out_specs=pl.BlockSpec((tb, tc), lambda j, i: (i, j)),
            ),
            compiler_params=pltpu.CompilerParams(
                dimension_semantics=("parallel", "parallel"),      # megacore (v7x)
            ),
        )(inv_x_p, x_b, wt_bf16)

        return out[:B, :C].reshape(B, 1, C)   # slice padding away, unsqueeze(1)

    return forward


def make_classifier_weight(key, out_neurons, input_size):
    """Deterministic xavier_uniform_ init for W [out_neurons, input_size]."""
    fan_in, fan_out = input_size, out_neurons
    bound = jnp.sqrt(6.0 / (fan_in + fan_out))
    return jax.random.uniform(
        key, (out_neurons, input_size), dtype=jnp.float32,
        minval=-bound, maxval=bound,
    )


def _reference(x, weight):
    """Plain-JAX f32 reference: F.linear(F.normalize(x), F.normalize(W))."""
    B, _, D = x.shape
    x2 = x.reshape(B, D)
    xn = x2 / jnp.maximum(jnp.linalg.norm(x2, axis=-1, keepdims=True), EPS)
    wn = weight / jnp.maximum(jnp.linalg.norm(weight, axis=-1, keepdims=True), EPS)
    return (xn @ wn.T).reshape(B, 1, -1)


if __name__ == "__main__":
    key = jax.random.PRNGKey(0)
    kx, kw, kx2, kw2 = jax.random.split(key, 4)

    # Small shapes consistent with the module: MyCNN emits [B, 1, lin_neurons];
    # the head maps D=lin_neurons features to C class scores.
    B, D, C = 6, 192, 10
    x = jax.random.normal(kx, (B, 1, D), dtype=jnp.float32)
    w = make_classifier_weight(kw, C, D)

    forward = make_cosine_classifier(w)          # constant-weight prep runs here, once
    out = jax.block_until_ready(forward(x))
    ref = _reference(x, w)
    assert out.shape == (B, 1, C)
    # bf16 MXU operands with f32 accumulation (and bf16-rounded unit-norm W rows):
    # |err| <~ 2*2^-8 on unit-norm dots.
    assert jnp.allclose(out, ref, atol=2e-2), float(jnp.max(jnp.abs(out - ref)))
    assert bool(jnp.all(jnp.abs(out) <= 1.0 + 1e-2))   # cosine-similarity bound

    # Larger case exercising multi-tile B (MXU-native 128/256 B tiles with
    # ragged padding), multi-tile C, and the fetch-W-once grid ordering.
    B2, D2, C2 = 300, 192, 300
    x2 = jax.random.normal(kx2, (B2, 1, D2), dtype=jnp.float32)
    w2 = make_classifier_weight(kw2, C2, D2)
    forward2 = make_cosine_classifier(w2)
    out2 = jax.block_until_ready(forward2(x2))
    ref2 = _reference(x2, w2)
    assert out2.shape == (B2, 1, C2)
    assert jnp.allclose(out2, ref2, atol=2e-2), float(jnp.max(jnp.abs(out2 - ref2)))

    print("KERNEL_OK")
</pallas_src>

<mosaic_0001>
module attributes {stable_mosaic.version = 11 : i64} {
  func.func @_cosine_head_kernel(%arg0: i32, %arg1: i32, %arg2: memref<16x1xf32, #tpu.memory_space<vmem>>, %arg3: memref<16x256xbf16, #tpu.memory_space<vmem>>, %arg4: memref<256x128xbf16, #tpu.memory_space<vmem>>, %arg5: memref<16x128xf32, #tpu.memory_space<vmem>>) attributes {dimension_semantics = [#tpu.dimension_semantics<parallel>, #tpu.dimension_semantics<parallel>], iteration_bounds = array<i64: 2, 1>, scalar_prefetch = 0 : i64, scratch_operands = 0 : i64, tpu.core_type = #tpu.core_type<tc>, window_params = [{transform_indices = @transform_0, window_bounds = array<i64: 16, 1>}, {transform_indices = @transform_1, window_bounds = array<i64: 16, 256>}, {transform_indices = @transform_2, window_bounds = array<i64: 256, 128>}, {transform_indices = @transform_3, window_bounds = array<i64: 16, 128>}]} {
    %c0 = arith.constant 0 : index
    %c0_0 = arith.constant 0 : index
    %0 = vector.load %arg3[%c0, %c0_0] : memref<16x256xbf16, #tpu.memory_space<vmem>>, vector<16x256xbf16>
    %c0_1 = arith.constant 0 : index
    %c0_2 = arith.constant 0 : index
    %1 = vector.load %arg4[%c0_1, %c0_2] : memref<256x128xbf16, #tpu.memory_space<vmem>>, vector<256x128xbf16>
    %cst = arith.constant dense<0.000000e+00> : vector<16x128xf32>
    %2 = tpu.matmul %0, %1, %cst {dimension_numbers = #tpu.dot_dimension_numbers<[1], [0], [0], [1], [0, 0, 1, 1], [], []>} : vector<16x256xbf16>, vector<256x128xbf16>, vector<16x128xf32> -> vector<16x128xf32>
    %c0_3 = arith.constant 0 : index
    %c0_4 = arith.constant 0 : index
    %3 = vector.load %arg2[%c0_3, %c0_4] : memref<16x1xf32, #tpu.memory_space<vmem>>, vector<16x1xf32>
    %4 = vector.broadcast %3 : vector<16x1xf32> to vector<16x128xf32>
    %5 = arith.mulf %2, %4 : vector<16x128xf32>
    %c0_5 = arith.constant 0 : index
    %c0_6 = arith.constant 0 : index
    %6 = vector.load %arg5[%c0_5, %c0_6] : memref<16x128xf32, #tpu.memory_space<vmem>>, vector<16x128xf32>
    tpu.vector_store %arg5[%c0_5, %c0_6], %5 {strides = array<i32>} : memref<16x128xf32, #tpu.memory_space<vmem>>, vector<16x128xf32>,
    return
  }
  func.func @transform_0(%arg0: i32, %arg1: i32) -> (i32, i32) {
    %c0_i32 = arith.constant 0 : i32
    %c0_i32_0 = arith.constant 0 : i32
    return %arg1, %c0_i32 : i32, i32
  }
  func.func @transform_1(%arg0: i32, %arg1: i32) -> (i32, i32) {
    %c0_i32 = arith.constant 0 : i32
    %c0_i32_0 = arith.constant 0 : i32
    return %arg1, %c0_i32 : i32, i32
  }
  func.func @transform_2(%arg0: i32, %arg1: i32) -> (i32, i32) {
    %c0_i32 = arith.constant 0 : i32
    %c0_i32_0 = arith.constant 0 : i32
    return %c0_i32, %arg0 : i32, i32
  }
  func.func @transform_3(%arg0: i32, %arg1: i32) -> (i32, i32) {
    %c0_i32 = arith.constant 0 : i32
    return %arg1, %arg0 : i32, i32
  }
}

</mosaic_0001>

<bundles_post_ra>
// kernel: forward.1
= control target key start
LH: loop header
LB: loop body
LE: loop exit
PB: predicated region body
PF: predicated region fallthrough
CT: control target
= control target key end

     0   :  { %8 = vsyncpa [#allocation3], 0  ;;  %s988_s0 = inlined_call_operand.vmem [shape: f32[16,1], index: 0, kind: input, shape index: {}]   ;;  %s989_s1 = inlined_call_operand.vmem [shape: bf16[16,256], index: 1, kind: input, shape index: {}]   ;;  %s990_s2 = inlined_call_operand.hbm [shape: bf16[256,256], index: 2, kind: input, shape index: {}]   ;;  %s991_s3 = inlined_call_operand.vmem [shape: f32[16,256], index: 3, kind: output, shape index: {}]  }
   0x1   :  { %10 = vsyncpa [#allocation3 + $0x1], 0  ;;  %s854_s12 = smov 0   ;;  %s856_s13 = smov 0  }
   0x2   :  { %s858_s14 = smov 0   ;;  %s860_s15 = smov 0  }
   0x3   :  { %s862_s16 = smov 0   ;;  %s864_s17 = smov 0  }
   0x4 LB: > { %s583_s18 = sadd.s32 4294967295, %s828_s17   ;;  %s28_s19 = sadd.s32 1, %s824_s16  ;;  %s828_s17 = sphi %s864_s17, %s16_s17   ;;  %s824_s16 = sphi %s862_s16, %s999_s16   ;;  %s820_s15 = sphi %s860_s15, %s998_s15   ;;  %s816_s14 = sphi %s858_s14, %s997_s14   ;;  %s812_s13 = sphi %s856_s13, %s996_s13   ;;  %s808_s12 = sphi %s854_s12, %s995_s12  }
   0x5   : > { %p30_p0 = scmp.ge.s32.totalorder %s28_s19, 2  ;;  %s87_s20 = sadd.s32 1, %s816_s14 }
   0x6   : > { %p94_p1 = scmp.ne.s32.totalorder %s816_s14, %s812_s13  ;;  %p95_p2 = scmp.eq.s32.totalorder %s828_s17, 0 }
   0x7   : > { %s1001_s19 = smov (%p30_p0, %s28_s19), 0  ;;  %p100_p4 = scmp.ne.s32.totalorder %s812_s13, %s808_s12 }
   0x8   : > { %p890_p3 = por %p95_p2, %p94_p1  ;;  %s84_s22 = ssub.s32 %s824_s16, %s1001_s19 }
   0x9   : > { %p101_p5 = scmp.eq.s32.totalorder %s583_s18, 0  ;;  %p85_p6 = scmp.eq.s32.totalorder %s84_s22, 0 }
   0xa   : > { %p126_p7 = scmp.eq.s32.totalorder %s583_s18, 1  ;;  %p694_p10 = scmp.lt.s32.totalorder %s828_s17, 2 }
   0xb   : > { %p897_p8 = por %p101_p5, %p100_p4  ;;  %s171_s26 = sand.u32 1, %s816_s14  }
   0xc   : > { %s902_s24 = scalar_select %p85_p6, %s816_s14, %s87_s20  }
   0xd   : > { %p904_p9 = por %p126_p7, %p94_p1  ;;  %s590_s27 = sshll.u32 %s824_s16, 2 }
   0xe   : > { %s589_s28 = sshll.u32 %s171_s26, 7  ;;  %s179_s4 = scalar_lea.hbm %s990_s2, %s590_s27 }
   0xf   : > { %s180_s5 = sshll.u32 %s179_s4, 4  ;;  %s175_s6 = scalar_lea.vmem [#allocation2], %s589_s28  ;;  %s181_s5 = int_to_ptr.hbm [resolvable:$true] %s180_s5 }
  0x10   : > { %s182_s7 = sshll.u32 %s175_s6, 4  ;;  %p691_p11 = pnand %p694_p10, %p890_p3  ;;  %s183_s7 = int_to_ptr.vmem [resolvable:$true] %s182_s7 }
  0x11   : > { %p591_p12 = scmp.ge.s32.totalorder %s828_s17, 1  ;;  %s172_s8 = scalar_lea.sflag [#allocation3], %s171_s26 }
  0x12   : > { %s830_s9 = smov 128   ;;  %s831_s10 = smov 64  }
  0x13   : > { %s832_s11 = smov 4   ;;  %p190_p13 = scmp.lt.s32.totalorder %s828_s17, 3 }
  0x14   : > { %693 = dma.hbm_to_vmem [thread:$0]  (!%p691_p11), %s181_s5, 2048, %s183_s7, %s172_s8, %s830_s9, %s831_s10, %s832_s11  }
  0x15   : > { %p191_p0 = pnand %p591_p12, %p190_p13 }
  0x16   : > { %s919_s12 = sand.u32 (!%p191_p0), 1, %s812_s13  }
  0x17   : > { %194 = sbr.rel (%p191_p0) target bundleno = 209 (0xd1), region = 32  ;;  %s592_s18 = sshll.u32 (!%p191_p0), %s919_s12, 7 }
  0x18   : > { %s197_s20 = scalar_lea.sflag (!%p191_p0), [#allocation3], %s919_s12  ;;  %s923_s22 = scalar_lea.vmem (!%p191_p0), [#allocation2], %s592_s18 }
  0x1c   : > { %803 = dma.done.wait (%p897_p8), %s197_s20, 2048  }
  0x1d   : > { %805 = vsyncadd (%p897_p8), %s197_s20, 4294965248  ;;  %v679_v0 = vld [vmem:[%s923_s22 + $0x38] sm:$0xff]  ;;  %v678_v2 = vld [vmem:[%s923_s22 + $0x30] sm:$0xff]  ;;  %v833_v4 = vmov 0   ;;  %s593_s9 = sshll.u32 %s919_s12, 4  ;;  %s667_s11 = sshll.u32 (%p904_p9), %s820_s15, 3 }
  0x1e   : > { %v687_v1 = vld [vmem:[%s923_s22 + $0x78] sm:$0xff]  ;;  %388 = vmatpush.bf16.msra.mxu0 %v679_v0  ;;  %v686_v3 = vld [vmem:[%s923_s22 + $0x70] sm:$0xff]  ;;  %747 = vset.pattern.permute.xlu0 %v833_v4  ;;  %v677_v5 = vld [vmem:[%s923_s22 + $0x28] sm:$0xff]  ;;  %s233_s10 = scalar_lea.vmem [#allocation4], %s593_s9  ;;  %s443_s20 = scalar_lea.vmem (%p904_p9), %s991_s3, %s667_s11 }
  0x1f   : > { %402 = vmatpush.bf16.msra.mxu1 %v687_v1  ;;  %v685_v6 = vld [vmem:[%s923_s22 + $0x68] sm:$0xff]  ;;  %v416_v7 = vld [vmem:[%s988_s0] sm:$0xff]  ;;  %v675_v11 = vld [vmem:[%s923_s22 + $0x18] sm:$0xff] }
  0x20   : > { %420 = vperm.xlu0 %747, %v416_v7   ;;  %v676_v8 = vld [vmem:[%s923_s22 + $0x20] sm:$0xff]  ;;  %v417_v10 = vld [vmem:[%s988_s0 + $0x8] sm:$0xff]  ;;  %v683_v12 = vld [vmem:[%s923_s22 + $0x58] sm:$0xff] }
  0x21   : > { %v684_v9 = vld [vmem:[%s923_s22 + $0x60] sm:$0xff]  ;;  %v674_v13 = vld [vmem:[%s923_s22 + $0x10] sm:$0xff]  ;;  %v673_v15 = vld [vmem:[%s923_s22 + $0x8] sm:$0xff] }
  0x22   : > { %389 = vmatpush.bf16.msra.mxu0 %v678_v2  ;;  %v682_v14 = vld [vmem:[%s923_s22 + $0x50] sm:$0xff]  ;;  %v681_v16 = vld [vmem:[%s923_s22 + $0x48] sm:$0xff]  ;;  %v672_v17 = vld [vmem:[%s923_s22] sm:$0xff] }
  0x23   : > { %403 = vmatpush.bf16.msra.mxu1 %v686_v3  ;;  %v680_v18 = vld [vmem:[%s923_s22 + $0x40] sm:$0xff]  ;;  %v671_v20 = vld [vmem:[%s989_s1 + $0x4] sm:$0xf0]  ;;  %v598_v22 = vld [vmem:[%s989_s1 + $0x8] sm:$0xf0] }
  0x24   : > { %v596_v19 = vld [vmem:[%s989_s1] sm:$0xf]  ;;  %v670_v21 = vld [vmem:[%s989_s1 + $0x4] sm:$0xf] }
  0x25   : > { %v597_v23 = vor.u32 %v671_v20, %v596_v19  ;;  %v601_v24 = vor.u32 %v670_v21, %v598_v22 }
  0x26   : > { %390 = vmatpush.bf16.msra.mxu0 %v677_v5 }
  0x27   : > { %404 = vmatpush.bf16.msra.mxu1 %v685_v6 }
  0x28   : > { %425 = vperm.xlu0 %747, %v417_v10  }
  0x2a   : > { %391 = vmatpush.bf16.msra.mxu0 %v676_v8 }
  0x2b   : > { %405 = vmatpush.bf16.msra.mxu1 %v684_v9 }
  0x2e   : > { %392 = vmatpush.bf16.msra.mxu0 %v675_v11 }
  0x2f   : > { %406 = vmatpush.bf16.msra.mxu1 %v683_v12 }
  0x32   : > { %393 = vmatpush.bf16.msra.mxu0 %v674_v13 }
  0x33   : > { %407 = vmatpush.bf16.msra.mxu1 %v682_v14 }
  0x36   : > { %394 = vmatpush.bf16.msra.mxu0 %v673_v15 }
  0x37   : > { %408 = vmatpush.bf16.msra.mxu1 %v681_v16 }
  0x3a   : > { %395 = vmatpush.bf16.msra.mxu0 %v672_v17 }
  0x3b   : > { %409 = vmatpush.bf16.msra.mxu1 %v680_v18 }
  0x3d   : > { %396 = vmatmul.bf16.vlgmr.msra.gmra.mxu0 %v597_v23 }
  0x3e   : > { %410 = vmatmul.bf16.vlgmr.msra.gmra.mxu1 %v601_v24 }
  0x92   : > { %v421_v25 = vpop.permute.xlu0 %420 }
  0x9a   : > { %v426_v33 = vpop.permute.xlu0 %425 }
  0xba   : > { %v397_v26 = vpop.f32.mrf.mxu0 }
  0xbb   : > { %v411_v27 = vpop.f32.mrf.mxu1 }
  0xbc   : > { %v412_v28 = vadd.f32 %v411_v27, %v397_v26 }
  0xbe   : > { %v428_v29 = vmul.f32 %v421_v25, %v412_v28 }
  0xc0   : > { %430 = vst [vmem:[%s233_s10] sm:$0xff] %v428_v29 }
  0xc2   : > { %v399_v30 = vpop.f32.mrf.mxu0 }
  0xc3   : > { %v413_v31 = vpop.f32.mrf.mxu1 }
  0xc4   : > { %v414_v32 = vadd.f32 %v413_v31, %v399_v30  ;;  %438 = sbr.rel (!%p904_p9) target bundleno = 209 (0xd1), region = 40 }
  0xc6   : > { %v429_v34 = vmul.f32 %v426_v33, %v414_v32 }
  0xc7   : > { %v474_v35 = vld [vmem:[%s233_s10] sm:$0xff] (%p904_p9) }
  0xc8   : > { %431 = vst [vmem:[%s233_s10 + $0x8] sm:$0xff] %v429_v34 }
  0xc9   : > { %475 = vst [vmem:[%s443_s20] sm:$0xff] %v474_v35 }
  0xcf   : > { %v476_v36 = vld [vmem:[%s233_s10 + $0x8] sm:$0xff] }
  0xd0   : > { %477 = vst [vmem:[%s443_s20 + $0x10] sm:$0xff] %v476_v36 }
  0xd1 PF: > { %s16_s17 = sadd.s32 1, %s828_s17   ;;  %s995_s12 = smov %s812_s13 }
  0xd2   : > { %p13_p1 = scmp.ge.s32.totalorder %s16_s17, 4   ;;  %s996_s13 = smov %s816_s14 }
  0xd3   : > { %s997_s14 = smov %s902_s24  ;;  %s998_s15 = smov %s824_s16 }
  0xd4   : > { %s999_s16 = smov %s1001_s19  ;;  %15 = sbr.rel (!%p13_p1) target bundleno = 4 (0x4), region = 116 }
  0xd9   :  { %493 = vsyncpa [#allocation3], 1 }
  0xda   :  { %495 = vsyncpa [#allocation3 + $0x1], 1 }

</bundles_post_ra>
